<compile_context>
chip_gen: v5e
topology: v5e:2x2
jax: 0.10.0
libtpu: 0.0.40
codegen_flags: <defaults>
</compile_context>

<pallas_src>
import math
import random as pyrandom
from functools import partial

import jax
import jax.numpy as jnp
from jax import lax
from jax.experimental import pallas as pl
from jax.experimental.pallas import tpu as pltpu

# ---------------------------------------------------------------------------
# Tiling / dispatch constants
# ---------------------------------------------------------------------------
_VMEM_TILE_BUDGET = 16 * 1024 * 1024   # bytes of double-buffered in+out tiles
_VMEM_LIMIT_BYTES = 32 * 1024 * 1024   # scoped VMEM request (safe on v5e/v6e/v7x)
_LANE_TILE_MAX = 2048                  # lane tile (multiple of 128) for long rows
_MIN_PALLAS_BYTES = 128 * 1024         # below this, XLA's fusable pad wins


def _sublane_pack(itemsize: int) -> int:
    """Sublane packing of the dtype: 8 rows f32, 16 bf16, 32 int8."""
    return max(8, 32 // max(itemsize, 1))


def _choose_tiling(rows, in_len, out_len, itemsize, lane_tile=None):
    """Pick (tile_r, tile_l) under a strict double-buffered VMEM budget.

    tile_l is None for the full-width (no lane tiling) path.  Returns
    (None, None) when no sensible Pallas tiling exists (tiny input padded to a
    huge target) — the caller then falls back to XLA pad."""
    pack = _sublane_pack(itemsize)
    if lane_tile is None:
        per_row = 2 * (in_len + out_len) * itemsize           # 2 pipeline buffers
        cap_rows = _VMEM_TILE_BUDGET // max(per_row, 1)
        if cap_rows >= min(rows, pack):                        # full-width rows fit
            tile_r = min(rows, cap_rows)
            if tile_r >= pack:
                tile_r = (tile_r // pack) * pack
            return max(tile_r, 1), None
        lane_tile = min(_LANE_TILE_MAX, (in_len // 128) * 128)
        if lane_tile < 128:
            return None, None
    else:
        if lane_tile % 128 != 0 or lane_tile > in_len:
            raise ValueError(f"lane_tile={lane_tile} must be a multiple of 128 "
                             f"and <= in_len={in_len}")
    # Lane-tiled path: worst case 2 input DMA streams + 1 output, x2 buffers.
    cap_r = _VMEM_TILE_BUDGET // max(6 * lane_tile * itemsize, 1)
    if cap_r >= pack:
        tile_r = min(rows, (cap_r // pack) * pack)
    else:
        tile_r = min(rows, max(cap_r, 1))
    return max(tile_r, 1), lane_tile


# ---------------------------------------------------------------------------
# Kernels
# ---------------------------------------------------------------------------
def _make_full_width_kernel(offset, fill_value, in_len, out_len):
    """Full-width blocks: compose [left fill | data | right fill] on the lane
    axis in registers and write the block with a single unmasked store."""
    left = offset
    right = out_len - offset - in_len

    def kernel(x_ref, o_ref):
        tile_r = o_ref.shape[0]
        parts = []
        if left > 0:
            parts.append(jnp.full((tile_r, left), fill_value, dtype=o_ref.dtype))
        parts.append(x_ref[...])
        if right > 0:
            parts.append(jnp.full((tile_r, right), fill_value, dtype=o_ref.dtype))
        o_ref[...] = parts[0] if len(parts) == 1 else jnp.concatenate(parts, axis=1)

    return kernel


def _make_lane_tiled_kernel(offset, fill_value, in_len, tile_l, two_blocks):
    """Lane-tiled blocks: output lane-block j needs input elements
    [j*tile_l - offset, (j+1)*tile_l - offset).  When the pad offset is not a
    multiple of tile_l that window straddles two adjacent input blocks, which
    are stitched with one lane concat (static sub-block shift r); an iota mask
    on the global lane index selects data vs. fill.  One unmasked full store."""
    r = (-offset) % tile_l

    def kernel(*refs):
        if two_blocks:
            a_ref, b_ref, o_ref = refs
            data = jnp.concatenate([a_ref[:, r:], b_ref[:, :r]], axis=1)
        else:
            a_ref, o_ref = refs
            data = a_ref[...]
        tile_r = o_ref.shape[0]
        j = pl.program_id(1)
        gidx = j * tile_l + lax.broadcasted_iota(jnp.int32, (tile_r, tile_l), 1)
        in_range = (gidx >= offset) & (gidx < offset + in_len)
        fill = jnp.full((tile_r, tile_l), fill_value, dtype=o_ref.dtype)
        o_ref[...] = jnp.where(in_range, data, fill)

    return kernel


def _make_slice_store_kernel(offset, fill_value, in_len, out_len):
    """v2-style fallback kernel (three slice stores).  Only used if the fused
    single-store composition fails to lower on the local Mosaic toolchain."""
    right_start = offset + in_len
    right_len = out_len - right_start

    def kernel(x_ref, o_ref):
        tile_r = o_ref.shape[0]
        if offset > 0:
            o_ref[:, :offset] = jnp.full((tile_r, offset), fill_value,
                                         dtype=o_ref.dtype)
        o_ref[:, offset:right_start] = x_ref[...]
        if right_len > 0:
            o_ref[:, right_start:] = jnp.full((tile_r, right_len), fill_value,
                                              dtype=o_ref.dtype)

    return kernel


# ---------------------------------------------------------------------------
# pallas_call wrappers
# ---------------------------------------------------------------------------
def _compiler_params(n_axes):
    return pltpu.CompilerParams(dimension_semantics=("parallel",) * n_axes,
                                vmem_limit_bytes=_VMEM_LIMIT_BYTES)


@partial(jax.jit, static_argnames=("out_len", "offset", "fill_value", "lane_tile"))
def _pad2d_fused(x2d, *, out_len, offset, fill_value, lane_tile=None):
    """Pad a [rows, in_len] array to [rows, out_len]; data placed at lane
    `offset`, remaining lanes = fill_value.  Single-store kernels, row-tiled,
    with an optional lane grid axis for very long last dims."""
    rows, in_len = x2d.shape
    itemsize = x2d.dtype.itemsize
    right = out_len - offset - in_len
    if offset < 0 or right < 0:
        raise ValueError("offset/out_len inconsistent with the input length")

    tile_r, tile_l = _choose_tiling(rows, in_len, out_len, itemsize, lane_tile)
    if tile_r is None:
        # TODO(synk): tiny input padded to a huge target; XLA pad handles it.
        return jnp.pad(x2d, ((0, 0), (offset, right)), constant_values=fill_value)

    cost = pl.CostEstimate(flops=0, transcendentals=0,
                           bytes_accessed=rows * (in_len + out_len) * itemsize)
    grid_r = pl.cdiv(rows, tile_r)

    if tile_l is None:
        return pl.pallas_call(
            _make_full_width_kernel(offset, fill_value, in_len, out_len),
            out_shape=jax.ShapeDtypeStruct((rows, out_len), x2d.dtype),
            grid_spec=pltpu.PrefetchScalarGridSpec(
                num_scalar_prefetch=0,
                grid=(grid_r,),
                in_specs=[pl.BlockSpec((tile_r, in_len), lambda i: (i, 0))],
                out_specs=pl.BlockSpec((tile_r, out_len), lambda i: (i, 0)),
            ),
            compiler_params=_compiler_params(1),
            cost_estimate=cost,
        )(x2d)

    # Lane-tiled path (very long last dims): 2-D grid, all blocks independent.
    grid_l = pl.cdiv(out_len, tile_l)
    nb_in = pl.cdiv(in_len, tile_l)
    two_blocks = ((-offset) % tile_l) != 0

    def a_map(i, j):
        bl = jnp.maximum(j * tile_l - offset, 0) // tile_l
        return (i, jnp.minimum(bl, nb_in - 1))

    def b_map(i, j):
        bl = jnp.maximum(j * tile_l - offset + tile_l, 0) // tile_l
        return (i, jnp.minimum(bl, nb_in - 1))

    in_specs = [pl.BlockSpec((tile_r, tile_l), a_map)]
    operands = [x2d]
    if two_blocks:
        # Second (shifted) DMA stream of the same input; only the boundary
        # lanes of each pair are actually consumed.
        in_specs.append(pl.BlockSpec((tile_r, tile_l), b_map))
        operands.append(x2d)

    return pl.pallas_call(
        _make_lane_tiled_kernel(offset, fill_value, in_len, tile_l, two_blocks),
        out_shape=jax.ShapeDtypeStruct((rows, out_len), x2d.dtype),
        grid_spec=pltpu.PrefetchScalarGridSpec(
            num_scalar_prefetch=0,
            grid=(grid_r, grid_l),
            in_specs=in_specs,
            out_specs=pl.BlockSpec((tile_r, tile_l), lambda i, j: (i, j)),
        ),
        compiler_params=_compiler_params(2),
        cost_estimate=cost,
    )(*operands)


@partial(jax.jit, static_argnames=("out_len", "offset", "fill_value"))
def _pad2d_slices(x2d, *, out_len, offset, fill_value):
    rows, in_len = x2d.shape
    itemsize = x2d.dtype.itemsize
    right = out_len - offset - in_len
    tile_r, tile_l = _choose_tiling(rows, in_len, out_len, itemsize)
    if tile_r is None or tile_l is not None:
        return jnp.pad(x2d, ((0, 0), (offset, right)), constant_values=fill_value)
    grid_r = pl.cdiv(rows, tile_r)
    return pl.pallas_call(
        _make_slice_store_kernel(offset, fill_value, in_len, out_len),
        out_shape=jax.ShapeDtypeStruct((rows, out_len), x2d.dtype),
        grid_spec=pltpu.PrefetchScalarGridSpec(
            num_scalar_prefetch=0,
            grid=(grid_r,),
            in_specs=[pl.BlockSpec((tile_r, in_len), lambda i: (i, 0))],
            out_specs=pl.BlockSpec((tile_r, out_len), lambda i: (i, 0)),
        ),
        compiler_params=_compiler_params(1),
    )(x2d)


_FUSED_OK = True  # flipped off once if the fused composition fails to lower


def pad_last_dim_pallas(x2d, *, out_len, offset, fill_value, lane_tile=None):
    """Dispatcher: fused single-store kernel, with a (still-Pallas) slice-store
    fallback for Mosaic versions without unaligned lane concatenation."""
    global _FUSED_OK
    if _FUSED_OK:
        try:
            return _pad2d_fused(x2d, out_len=out_len, offset=offset,
                                fill_value=fill_value, lane_tile=lane_tile)
        except Exception:
            _FUSED_OK = False
    return _pad2d_slices(x2d, out_len=out_len, offset=offset,
                         fill_value=fill_value)


# ---------------------------------------------------------------------------
# Module wrapper
# ---------------------------------------------------------------------------
class PadDimPallas:
    """JAX/Pallas port of conette's PadDim (constant mode)."""

    ALIGNS = ("left", "right", "center", "random")

    def __init__(self, target_length, align="left", fill_value=0.0, dim=-1,
                 mode="constant", p=1.0, seed=0):
        if align not in PadDimPallas.ALIGNS:
            raise ValueError(f"Invalid argument align={align!r}. "
                             f"(expected one of {PadDimPallas.ALIGNS})")
        if mode != "constant":
            # TODO(synk): 'reflect'/'replicate'/'circular' pad modes not implemented.
            raise NotImplementedError(mode)
        self.target_length = target_length
        self.align = align
        self.fill_value = fill_value
        self.dim = dim
        self.mode = mode
        self.p = p
        self._rng = pyrandom.Random(seed)  # host RNG: align='random' and p

    def apply_transform(self, x):
        dim = self.dim if self.dim >= 0 else x.ndim + self.dim
        cur_len = x.shape[dim]
        missing = max(self.target_length - cur_len, 0)
        if missing == 0:
            return x  # nothing to pad: no copy, no kernel launch

        if self.align == "left":
            left = 0
        elif self.align == "right":
            left = missing
        elif self.align == "center":
            left = missing // 2 + missing % 2
        else:  # 'random' — host-side draw, baked as a static offset per call.
            left = self._rng.randint(0, missing)
        right = missing - left
        out_len = cur_len + missing
        fill = float(self.fill_value)

        if dim != x.ndim - 1:
            # TODO(synk): no layout-native Pallas kernel for middle dims yet;
            # XLA pad in the native layout avoids the two HBM transposes a
            # moveaxis round-trip would cost.
            pad_width = [(0, 0)] * x.ndim
            pad_width[dim] = (left, right)
            return jnp.pad(x, pad_width, constant_values=fill)

        rows = math.prod(x.shape[:-1])
        if out_len < 128 or rows * out_len * x.dtype.itemsize < _MIN_PALLAS_BYTES:
            # Narrow / tiny outputs: launch overhead + sub-128-lane stores make
            # XLA's (fusable) pad the better choice.
            pad_width = [(0, 0)] * x.ndim
            pad_width[dim] = (left, right)
            return jnp.pad(x, pad_width, constant_values=fill)

        out2d = pad_last_dim_pallas(x.reshape(rows, cur_len), out_len=out_len,
                                    offset=left, fill_value=fill)
        return out2d.reshape(*x.shape[:-1], out_len)

    def __call__(self, x):
        floor_p = math.floor(self.p)
        for _ in range(floor_p):
            x = self.apply_transform(x)
        rest = self.p - floor_p
        # NOTE: condition kept identical to the PyTorch reference
        # (`rest < random.random()`), i.e. the extra transform fires with
        # probability (1 - rest).
        if rest > 0.0 and rest < self._rng.random():
            return self.apply_transform(x)
        return x


# ---------------------------------------------------------------------------
# Self-test
# ---------------------------------------------------------------------------
if __name__ == "__main__":
    key = jax.random.PRNGKey(0)
    # Audio-feature-like input (conette pads time dims): pad last dim 300 -> 512.
    x = jax.random.normal(key, (2, 4, 16, 300), dtype=jnp.float32)
    missing = 512 - 300

    def ref_pad(arr, left, right, fill=0.0):
        widths = [(0, 0)] * (arr.ndim - 1) + [(left, right)]
        return jnp.pad(arr, widths, constant_values=fill)

    # left / right / center alignment (Pallas full-width path)
    y_l = jax.block_until_ready(PadDimPallas(512, align="left")(x))
    assert y_l.shape == (2, 4, 16, 512), y_l.shape
    assert jnp.array_equal(y_l, ref_pad(x, 0, missing)), "left"

    y_r = jax.block_until_ready(PadDimPallas(512, align="right")(x))
    assert jnp.array_equal(y_r, ref_pad(x, missing, 0)), "right"

    y_c = jax.block_until_ready(PadDimPallas(512, align="center")(x))
    assert jnp.array_equal(y_c, ref_pad(x, 106, 106)), "center"

    # non-zero fill value
    y_f = jax.block_until_ready(PadDimPallas(512, align="right", fill_value=3.5)(x))
    assert jnp.array_equal(y_f, ref_pad(x, missing, 0, 3.5)), "fill"

    # align='random' (deterministic host RNG; replicate the draw for the reference)
    expected_off = pyrandom.Random(123).randint(0, missing)
    y_rand = jax.block_until_ready(PadDimPallas(512, align="random", seed=123)(x))
    assert jnp.array_equal(y_rand,
                           ref_pad(x, expected_off, missing - expected_off)), "random"

    # no-op when the dim is already long enough
    y_n = jax.block_until_ready(PadDimPallas(128)(x))
    assert y_n.shape == x.shape and jnp.array_equal(y_n, x), "noop"

    # 1-D docstring example (tiny -> XLA pad bypass)
    x1 = jnp.ones((6,), dtype=jnp.float32)
    y1 = jax.block_until_ready(PadDimPallas(10, align="right")(x1))
    assert jnp.array_equal(y1, jnp.concatenate([jnp.zeros(4), jnp.ones(6)])), "1d"

    # lane-tiled kernel (the 2-D grid used for very long last dims), forced on a
    # small shape here: unaligned offset (two-input stitch) ...
    x2 = jax.random.normal(jax.random.PRNGKey(1), (64, 700), dtype=jnp.float32)
    y2 = jax.block_until_ready(pad_last_dim_pallas(
        x2, out_len=1100, offset=217, fill_value=1.25, lane_tile=512))
    assert jnp.array_equal(
        y2, jnp.pad(x2, ((0, 0), (217, 183)), constant_values=1.25)), "lane-tiled"

    # ... and a block-aligned offset (single-input variant).
    y3 = jax.block_until_ready(pad_last_dim_pallas(
        x2, out_len=1300, offset=512, fill_value=0.0, lane_tile=512))
    assert jnp.array_equal(y3, jnp.pad(x2, ((0, 0), (512, 88)))), "lane-tiled aligned"

    print("KERNEL_OK")
</pallas_src>

<mosaic_0001>
module attributes {stable_mosaic.version = 11 : i64} {
  func.func @kernel(%arg0: i32, %arg1: memref<128x300xf32, #tpu.memory_space<vmem>>, %arg2: memref<128x512xf32, #tpu.memory_space<vmem>>) attributes {dimension_semantics = [#tpu.dimension_semantics<parallel>], iteration_bounds = array<i64: 1>, scalar_prefetch = 0 : i64, scratch_operands = 0 : i64, tpu.core_type = #tpu.core_type<tc>, window_params = [{transform_indices = @transform_0, window_bounds = array<i64: 128, 300>}, {transform_indices = @transform_1, window_bounds = array<i64: 128, 512>}]} {
    %c0 = arith.constant 0 : index
    %c0_0 = arith.constant 0 : index
    %0 = vector.load %arg1[%c0, %c0_0] : memref<128x300xf32, #tpu.memory_space<vmem>>, vector<128x300xf32>
    %cst = arith.constant 0.000000e+00 : f32
    %1 = vector.broadcast %cst : f32 to vector<128x212xf32>
    %2 = tpu.concatenate %0, %1 in 1 : vector<128x300xf32>, vector<128x212xf32> -> vector<128x512xf32>
    %c0_1 = arith.constant 0 : index
    %c0_2 = arith.constant 0 : index
    %3 = vector.load %arg2[%c0_1, %c0_2] : memref<128x512xf32, #tpu.memory_space<vmem>>, vector<128x512xf32>
    tpu.vector_store %arg2[%c0_1, %c0_2], %2 {strides = array<i32>} : memref<128x512xf32, #tpu.memory_space<vmem>>, vector<128x512xf32>,
    return
  }
  func.func @transform_0(%arg0: i32) -> (i32, i32) {
    %c0_i32 = arith.constant 0 : i32
    %c0_i32_0 = arith.constant 0 : i32
    return %arg0, %c0_i32 : i32, i32
  }
  func.func @transform_1(%arg0: i32) -> (i32, i32) {
    %c0_i32 = arith.constant 0 : i32
    %c0_i32_0 = arith.constant 0 : i32
    return %arg0, %c0_i32 : i32, i32
  }
}

module attributes {stable_mosaic.version = 11 : i64} {
  func.func @kernel(%arg0: i32, %arg1: memref<128x300xf32, #tpu.memory_space<vmem>>, %arg2: memref<128x512xf32, #tpu.memory_space<vmem>>) attributes {dimension_semantics = [#tpu.dimension_semantics<parallel>], iteration_bounds = array<i64: 1>, scalar_prefetch = 0 : i64, scratch_operands = 0 : i64, tpu.core_type = #tpu.core_type<tc>, window_params = [{transform_indices = @transform_0, window_bounds = array<i64: 128, 300>}, {transform_indices = @transform_1, window_bounds = array<i64: 128, 512>}]} {
    %c0 = arith.constant 0 : index
    %c0_0 = arith.constant 0 : index
    %0 = vector.load %arg1[%c0, %c0_0] : memref<128x300xf32, #tpu.memory_space<vmem>>, vector<128x300xf32>
    %c0_1 = arith.constant 0 : index
    %c0_2 = arith.constant 0 : index
    %1 = vector.load %arg2[%c0_1, %c0_2] : memref<128x512xf32, #tpu.memory_space<vmem>>, vector<128x300xf32>
    tpu.vector_store %arg2[%c0_1, %c0_2], %0 {strides = array<i32>} : memref<128x512xf32, #tpu.memory_space<vmem>>, vector<128x300xf32>,
    %cst = arith.constant 0.000000e+00 : f32
    %2 = vector.broadcast %cst : f32 to vector<128x212xf32>
    %c0_3 = arith.constant 0 : index
    %c300 = arith.constant 300 : index
    %3 = vector.load %arg2[%c0_3, %c300] : memref<128x512xf32, #tpu.memory_space<vmem>>, vector<128x212xf32>
    tpu.vector_store %arg2[%c0_3, %c300], %2 {strides = array<i32>} : memref<128x512xf32, #tpu.memory_space<vmem>>, vector<128x212xf32>,
    return
  }
  func.func @transform_0(%arg0: i32) -> (i32, i32) {
    %c0_i32 = arith.constant 0 : i32
    %c0_i32_0 = arith.constant 0 : i32
    return %arg0, %c0_i32 : i32, i32
  }
  func.func @transform_1(%arg0: i32) -> (i32, i32) {
    %c0_i32 = arith.constant 0 : i32
    %c0_i32_0 = arith.constant 0 : i32
    return %arg0, %c0_i32 : i32, i32
  }
}

</mosaic_0001>

<bundles_post_ra>
// kernel: _pad2d_fused.1
= control target key start
LH: loop header
LB: loop body
LE: loop exit
PB: predicated region body
PF: predicated region fallthrough
CT: control target
= control target key end

     0   :  { %vm57_vm0 = vcmask 359424   ;;  %v186_v4 = vmov 0.0   ;;  %s363_s0 = inlined_call_operand.vmem [shape: f32[128,300], index: 0, kind: input, shape index: {}]   ;;  %s364_s1 = inlined_call_operand.hbm [shape: f32[128,512], index: 1, kind: output, shape index: {}]  }
   0x1   :  { %v9_v0 = vld [vmem:[%s363_s0] sm:$0xff]  ;;  %v10_v1 = vld [vmem:[%s363_s0 + $0x8] sm:$0xff]  ;;  %v11_v2 = vld [vmem:[%s363_s0 + $0x10] sm:$0xff]  ;;  %77 = vst [vmem:[#allocation2 + $0x18] sm:$0xff] %v186_v4 }
   0x2   :  { %74 = vst [vmem:[#allocation2] sm:$0xff] %v9_v0  ;;  %v58_v3 = vsel %vm57_vm0, %v11_v2, 0.0 }
   0x3   :  { %75 = vst [vmem:[#allocation2 + $0x8] sm:$0xff] %v10_v1 }
   0x4   :  { %76 = vst [vmem:[#allocation2 + $0x10] sm:$0xff] %v58_v3 }
   0x5   :  { %81 = vst [vmem:[#allocation2 + $0x38] sm:$0xff] %v186_v4 }
   0x6   :  { %85 = vst [vmem:[#allocation2 + $0x58] sm:$0xff] %v186_v4 }
   0x7   :  { %89 = vst [vmem:[#allocation2 + $0x78] sm:$0xff] %v186_v4 }
   0x8   :  { %93 = vst [vmem:[#allocation2 + $0x98] sm:$0xff] %v186_v4 }
   0x9   :  { %97 = vst [vmem:[#allocation2 + $0xb8] sm:$0xff] %v186_v4 }
   0xa   :  { %6 = vsyncpa [#allocation3], 0  ;;  %101 = vst [vmem:[#allocation2 + $0xd8] sm:$0xff] %v186_v4  ;;  %v14_v5 = vld [vmem:[%s363_s0 + $0x28] sm:$0xff]  ;;  %v12_v6 = vld [vmem:[%s363_s0 + $0x18] sm:$0xff]  ;;  %s187_s11 = smov [#allocation2]  }
   0xb   :  { %105 = vst [vmem:[#allocation2 + $0xf8] sm:$0xff] %v186_v4  ;;  %v13_v7 = vld [vmem:[%s363_s0 + $0x20] sm:$0xff]  ;;  %v59_v8 = vsel %vm57_vm0, %v14_v5, 0.0  ;;  %v15_v10 = vld [vmem:[%s363_s0 + $0x30] sm:$0xff]  ;;  %v16_v11 = vld [vmem:[%s363_s0 + $0x38] sm:$0xff]  ;;  %s142_s12 = sshll.u32 %s187_s11, 4  ;;  %s143_s12 = int_to_ptr.vmem [resolvable:$true] %s142_s12 }
   0xc   :  { %109 = vst [vmem:[#allocation2 + $0x118] sm:$0xff] %v186_v4  ;;  %v17_v9 = vld [vmem:[%s363_s0 + $0x40] sm:$0xff]  ;;  %v20_v13 = vld [vmem:[%s363_s0 + $0x58] sm:$0xff]  ;;  %v18_v14 = vld [vmem:[%s363_s0 + $0x48] sm:$0xff]  ;;  %s144_s15 = sshll.u32 %s364_s1, 4  ;;  %s188_s20 = smov 512   ;;  %s145_s15 = int_to_ptr.hbm [resolvable:$true] %s144_s15 }
   0xd   :  { %113 = vst [vmem:[#allocation2 + $0x138] sm:$0xff] %v186_v4  ;;  %v60_v12 = vsel %vm57_vm0, %v17_v9, 0.0  ;;  %v19_v15 = vld [vmem:[%s363_s0 + $0x50] sm:$0xff]  ;;  %v61_v16 = vsel %vm57_vm0, %v20_v13, 0.0  ;;  %v21_v18 = vld [vmem:[%s363_s0 + $0x60] sm:$0xff]  ;;  %v22_v19 = vld [vmem:[%s363_s0 + $0x68] sm:$0xff] }
   0xe   :  { %117 = vst [vmem:[#allocation2 + $0x158] sm:$0xff] %v186_v4  ;;  %v23_v17 = vld [vmem:[%s363_s0 + $0x70] sm:$0xff]  ;;  %v26_v21 = vld [vmem:[%s363_s0 + $0x88] sm:$0xff]  ;;  %v24_v22 = vld [vmem:[%s363_s0 + $0x78] sm:$0xff]  ;;  %s189_s1 = smov 32  }
   0xf   :  { %121 = vst [vmem:[#allocation2 + $0x178] sm:$0xff] %v186_v4  ;;  %v62_v20 = vsel %vm57_vm0, %v23_v17, 0.0  ;;  %v25_v23 = vld [vmem:[%s363_s0 + $0x80] sm:$0xff]  ;;  %v63_v24 = vsel %vm57_vm0, %v26_v21, 0.0  ;;  %v27_v26 = vld [vmem:[%s363_s0 + $0x90] sm:$0xff]  ;;  %v28_v27 = vld [vmem:[%s363_s0 + $0x98] sm:$0xff] }
  0x10   :  { %125 = vst [vmem:[#allocation2 + $0x198] sm:$0xff] %v186_v4  ;;  %v29_v25 = vld [vmem:[%s363_s0 + $0xa0] sm:$0xff]  ;;  %v32_v29 = vld [vmem:[%s363_s0 + $0xb8] sm:$0xff]  ;;  %v30_v30 = vld [vmem:[%s363_s0 + $0xa8] sm:$0xff] }
  0x11   :  { %129 = vst [vmem:[#allocation2 + $0x1b8] sm:$0xff] %v186_v4  ;;  %v64_v28 = vsel %vm57_vm0, %v29_v25, 0.0  ;;  %v31_v31 = vld [vmem:[%s363_s0 + $0xb0] sm:$0xff]  ;;  %v65_v32 = vsel %vm57_vm0, %v32_v29, 0.0  ;;  %v33_v34 = vld [vmem:[%s363_s0 + $0xc0] sm:$0xff]  ;;  %v34_v35 = vld [vmem:[%s363_s0 + $0xc8] sm:$0xff] }
  0x12   :  { %133 = vst [vmem:[#allocation2 + $0x1d8] sm:$0xff] %v186_v4  ;;  %v35_v33 = vld [vmem:[%s363_s0 + $0xd0] sm:$0xff]  ;;  %v38_v37 = vld [vmem:[%s363_s0 + $0xe8] sm:$0xff]  ;;  %v36_v38 = vld [vmem:[%s363_s0 + $0xd8] sm:$0xff] }
  0x13   :  { %137 = vst [vmem:[#allocation2 + $0x1f8] sm:$0xff] %v186_v4  ;;  %v66_v36 = vsel %vm57_vm0, %v35_v33, 0.0  ;;  %v37_v39 = vld [vmem:[%s363_s0 + $0xe0] sm:$0xff]  ;;  %v67_v40 = vsel %vm57_vm0, %v38_v37, 0.0  ;;  %v39_v42 = vld [vmem:[%s363_s0 + $0xf0] sm:$0xff]  ;;  %v40_v43 = vld [vmem:[%s363_s0 + $0xf8] sm:$0xff] }
  0x14   :  { %78 = vst [vmem:[#allocation2 + $0x20] sm:$0xff] %v12_v6  ;;  %v41_v41 = vld [vmem:[%s363_s0 + $0x100] sm:$0xff]  ;;  %v44_v45 = vld [vmem:[%s363_s0 + $0x118] sm:$0xff]  ;;  %v42_v46 = vld [vmem:[%s363_s0 + $0x108] sm:$0xff] }
  0x15   :  { %79 = vst [vmem:[#allocation2 + $0x28] sm:$0xff] %v13_v7  ;;  %v68_v44 = vsel %vm57_vm0, %v41_v41, 0.0  ;;  %v43_v47 = vld [vmem:[%s363_s0 + $0x110] sm:$0xff]  ;;  %v69_v48 = vsel %vm57_vm0, %v44_v45, 0.0  ;;  %v45_v50 = vld [vmem:[%s363_s0 + $0x120] sm:$0xff]  ;;  %v46_v51 = vld [vmem:[%s363_s0 + $0x128] sm:$0xff] }
  0x16   :  { %80 = vst [vmem:[#allocation2 + $0x30] sm:$0xff] %v59_v8  ;;  %v47_v49 = vld [vmem:[%s363_s0 + $0x130] sm:$0xff]  ;;  %v50_v53 = vld [vmem:[%s363_s0 + $0x148] sm:$0xff]  ;;  %v48_v54 = vld [vmem:[%s363_s0 + $0x138] sm:$0xff] }
  0x17   :  { %82 = vst [vmem:[#allocation2 + $0x40] sm:$0xff] %v15_v10  ;;  %v70_v52 = vsel %vm57_vm0, %v47_v49, 0.0  ;;  %v49_v55 = vld [vmem:[%s363_s0 + $0x140] sm:$0xff]  ;;  %v71_v56 = vsel %vm57_vm0, %v50_v53, 0.0  ;;  %v51_v58 = vld [vmem:[%s363_s0 + $0x150] sm:$0xff]  ;;  %v52_v59 = vld [vmem:[%s363_s0 + $0x158] sm:$0xff] }
  0x18   :  { %83 = vst [vmem:[#allocation2 + $0x48] sm:$0xff] %v16_v11  ;;  %v53_v57 = vld [vmem:[%s363_s0 + $0x160] sm:$0xff]  ;;  %v56_v61 = vld [vmem:[%s363_s0 + $0x178] sm:$0xff]  ;;  %v54_v62 = vld [vmem:[%s363_s0 + $0x168] sm:$0xff] }
  0x19   :  { %84 = vst [vmem:[#allocation2 + $0x50] sm:$0xff] %v60_v12  ;;  %v72_v60 = vsel %vm57_vm0, %v53_v57, 0.0  ;;  %v55_v63 = vld [vmem:[%s363_s0 + $0x170] sm:$0xff]  ;;  %v73_v0 = vsel %vm57_vm0, %v56_v61, 0.0 }
  0x1a   :  { %86 = vst [vmem:[#allocation2 + $0x60] sm:$0xff] %v18_v14 }
  0x1b   :  { %87 = vst [vmem:[#allocation2 + $0x68] sm:$0xff] %v19_v15 }
  0x1c   :  { %88 = vst [vmem:[#allocation2 + $0x70] sm:$0xff] %v61_v16 }
  0x1d   :  { %90 = vst [vmem:[#allocation2 + $0x80] sm:$0xff] %v21_v18 }
  0x1e   :  { %91 = vst [vmem:[#allocation2 + $0x88] sm:$0xff] %v22_v19 }
  0x1f   :  { %92 = vst [vmem:[#allocation2 + $0x90] sm:$0xff] %v62_v20 }
  0x20   :  { %94 = vst [vmem:[#allocation2 + $0xa0] sm:$0xff] %v24_v22 }
  0x21   :  { %95 = vst [vmem:[#allocation2 + $0xa8] sm:$0xff] %v25_v23 }
  0x22   :  { %96 = vst [vmem:[#allocation2 + $0xb0] sm:$0xff] %v63_v24 }
  0x23   :  { %98 = vst [vmem:[#allocation2 + $0xc0] sm:$0xff] %v27_v26 }
  0x24   :  { %99 = vst [vmem:[#allocation2 + $0xc8] sm:$0xff] %v28_v27 }
  0x25   :  { %100 = vst [vmem:[#allocation2 + $0xd0] sm:$0xff] %v64_v28 }
  0x26   :  { %102 = vst [vmem:[#allocation2 + $0xe0] sm:$0xff] %v30_v30 }
  0x27   :  { %103 = vst [vmem:[#allocation2 + $0xe8] sm:$0xff] %v31_v31 }
  0x28   :  { %104 = vst [vmem:[#allocation2 + $0xf0] sm:$0xff] %v65_v32 }
  0x29   :  { %106 = vst [vmem:[#allocation2 + $0x100] sm:$0xff] %v33_v34 }
  0x2a   :  { %107 = vst [vmem:[#allocation2 + $0x108] sm:$0xff] %v34_v35 }
  0x2b   :  { %108 = vst [vmem:[#allocation2 + $0x110] sm:$0xff] %v66_v36 }
  0x2c   :  { %110 = vst [vmem:[#allocation2 + $0x120] sm:$0xff] %v36_v38 }
  0x2d   :  { %111 = vst [vmem:[#allocation2 + $0x128] sm:$0xff] %v37_v39 }
  0x2e   :  { %112 = vst [vmem:[#allocation2 + $0x130] sm:$0xff] %v67_v40 }
  0x2f   :  { %114 = vst [vmem:[#allocation2 + $0x140] sm:$0xff] %v39_v42 }
  0x30   :  { %115 = vst [vmem:[#allocation2 + $0x148] sm:$0xff] %v40_v43 }
  0x31   :  { %116 = vst [vmem:[#allocation2 + $0x150] sm:$0xff] %v68_v44 }
  0x32   :  { %118 = vst [vmem:[#allocation2 + $0x160] sm:$0xff] %v42_v46 }
  0x33   :  { %119 = vst [vmem:[#allocation2 + $0x168] sm:$0xff] %v43_v47 }
  0x34   :  { %120 = vst [vmem:[#allocation2 + $0x170] sm:$0xff] %v69_v48 }
  0x35   :  { %122 = vst [vmem:[#allocation2 + $0x180] sm:$0xff] %v45_v50 }
  0x36   :  { %123 = vst [vmem:[#allocation2 + $0x188] sm:$0xff] %v46_v51 }
  0x37   :  { %124 = vst [vmem:[#allocation2 + $0x190] sm:$0xff] %v70_v52 }
  0x38   :  { %126 = vst [vmem:[#allocation2 + $0x1a0] sm:$0xff] %v48_v54 }
  0x39   :  { %127 = vst [vmem:[#allocation2 + $0x1a8] sm:$0xff] %v49_v55 }
  0x3a   :  { %128 = vst [vmem:[#allocation2 + $0x1b0] sm:$0xff] %v71_v56 }
  0x3b   :  { %130 = vst [vmem:[#allocation2 + $0x1c0] sm:$0xff] %v51_v58 }
  0x3c   :  { %131 = vst [vmem:[#allocation2 + $0x1c8] sm:$0xff] %v52_v59 }
  0x3d   :  { %132 = vst [vmem:[#allocation2 + $0x1d0] sm:$0xff] %v72_v60 }
  0x3e   :  { %134 = vst [vmem:[#allocation2 + $0x1e0] sm:$0xff] %v54_v62 }
  0x3f   :  { %135 = vst [vmem:[#allocation2 + $0x1e8] sm:$0xff] %v55_v63 }
  0x40   :  { %136 = vst [vmem:[#allocation2 + $0x1f0] sm:$0xff] %v73_v0 }
  0x41   :  { %150 = dma.vmem_to_hbm [thread:$0]  %s143_s12, 8192, %s145_s15, [#allocation3], %s188_s20, %s188_s20, %s189_s1  }
  0x42   :  { %184 = dma.done.wait [#allocation3], 8192  }
  0x43   :  { %185 = vsyncadd [#allocation3], 4294959104 }
  0x44   :  { %155 = vsyncpa [#allocation3], 1 }

// kernel: _pad2d_slices.1
= control target key start
LH: loop header
LB: loop body
LE: loop exit
PB: predicated region body
PF: predicated region fallthrough
CT: control target
= control target key end

     0   :  { %vm59_vm0 = vcmask 359424   ;;  %s380_s0 = inlined_call_operand.vmem [shape: f32[128,300], index: 0, kind: input, shape index: {}]   ;;  %s381_s1 = inlined_call_operand.hbm [shape: f32[128,512], index: 1, kind: output, shape index: {}]  }
   0x1   :  { %v11_v0 = vld [vmem:[%s380_s0 + $0x10] sm:$0xff]  ;;  %v14_v1 = vld [vmem:[%s380_s0 + $0x28] sm:$0xff]  ;;  %v17_v2 = vld [vmem:[%s380_s0 + $0x40] sm:$0xff] }
   0x2   :  { %60 = vst.msk [vmem:[#allocation2 + $0x10] sm:$0xff] %vm59_vm0, %v11_v0  ;;  %v20_v3 = vld [vmem:[%s380_s0 + $0x58] sm:$0xff]  ;;  %v23_v4 = vld [vmem:[%s380_s0 + $0x70] sm:$0xff]  ;;  %v26_v5 = vld [vmem:[%s380_s0 + $0x88] sm:$0xff] }
   0x3   :  { %63 = vst.msk [vmem:[#allocation2 + $0x30] sm:$0xff] %vm59_vm0, %v14_v1  ;;  %v29_v6 = vld [vmem:[%s380_s0 + $0xa0] sm:$0xff]  ;;  %v32_v7 = vld [vmem:[%s380_s0 + $0xb8] sm:$0xff]  ;;  %v35_v8 = vld [vmem:[%s380_s0 + $0xd0] sm:$0xff] }
   0x4   :  { %66 = vst.msk [vmem:[#allocation2 + $0x50] sm:$0xff] %vm59_vm0, %v17_v2  ;;  %v38_v9 = vld [vmem:[%s380_s0 + $0xe8] sm:$0xff]  ;;  %v41_v10 = vld [vmem:[%s380_s0 + $0x100] sm:$0xff]  ;;  %v44_v11 = vld [vmem:[%s380_s0 + $0x118] sm:$0xff] }
   0x5   :  { %69 = vst.msk [vmem:[#allocation2 + $0x70] sm:$0xff] %vm59_vm0, %v20_v3  ;;  %v47_v12 = vld [vmem:[%s380_s0 + $0x130] sm:$0xff]  ;;  %v50_v13 = vld [vmem:[%s380_s0 + $0x148] sm:$0xff]  ;;  %v53_v14 = vld [vmem:[%s380_s0 + $0x160] sm:$0xff] }
   0x6   :  { %72 = vst.msk [vmem:[#allocation2 + $0x90] sm:$0xff] %vm59_vm0, %v23_v4  ;;  %v56_v15 = vld [vmem:[%s380_s0 + $0x178] sm:$0xff]  ;;  %v9_v16 = vld [vmem:[%s380_s0] sm:$0xff]  ;;  %v10_v17 = vld [vmem:[%s380_s0 + $0x8] sm:$0xff] }
   0x7   :  { %75 = vst.msk [vmem:[#allocation2 + $0xb0] sm:$0xff] %vm59_vm0, %v26_v5  ;;  %v12_v18 = vld [vmem:[%s380_s0 + $0x18] sm:$0xff] }
   0x8   :  { %78 = vst.msk [vmem:[#allocation2 + $0xd0] sm:$0xff] %vm59_vm0, %v29_v6 }
   0x9   :  { %81 = vst.msk [vmem:[#allocation2 + $0xf0] sm:$0xff] %vm59_vm0, %v32_v7 }
   0xa   :  { %84 = vst.msk [vmem:[#allocation2 + $0x110] sm:$0xff] %vm59_vm0, %v35_v8 }
   0xb   :  { %87 = vst.msk [vmem:[#allocation2 + $0x130] sm:$0xff] %vm59_vm0, %v38_v9 }
   0xc   :  { %90 = vst.msk [vmem:[#allocation2 + $0x150] sm:$0xff] %vm59_vm0, %v41_v10 }
   0xd   :  { %93 = vst.msk [vmem:[#allocation2 + $0x170] sm:$0xff] %vm59_vm0, %v44_v11 }
   0xe   :  { %96 = vst.msk [vmem:[#allocation2 + $0x190] sm:$0xff] %vm59_vm0, %v47_v12 }
   0xf   :  { %99 = vst.msk [vmem:[#allocation2 + $0x1b0] sm:$0xff] %vm59_vm0, %v50_v13 }
  0x10   :  { %102 = vst.msk [vmem:[#allocation2 + $0x1d0] sm:$0xff] %vm59_vm0, %v53_v14 }
  0x11   :  { %105 = vst.msk [vmem:[#allocation2 + $0x1f0] sm:$0xff] %vm59_vm0, %v56_v15 }
  0x12   :  { %6 = vsyncpa [#allocation3], 0  ;;  %57 = vst [vmem:[#allocation2] sm:$0xff] %v9_v16  ;;  %v13_v19 = vld [vmem:[%s380_s0 + $0x20] sm:$0xff]  ;;  %v15_v20 = vld [vmem:[%s380_s0 + $0x30] sm:$0xff]  ;;  %vm106_vm1 = vcmask 1047904  }
  0x13   :  { %58 = vst [vmem:[#allocation2 + $0x8] sm:$0xff] %v10_v17  ;;  %v16_v21 = vld [vmem:[%s380_s0 + $0x38] sm:$0xff]  ;;  %v18_v22 = vld [vmem:[%s380_s0 + $0x48] sm:$0xff]  ;;  %v19_v23 = vld [vmem:[%s380_s0 + $0x50] sm:$0xff]  ;;  %v187_v48 = vmov 0.0   ;;  %s145_s18 = sshll.u32 %s381_s1, 4  ;;  %s146_s18 = int_to_ptr.hbm [resolvable:$true] %s145_s18 }
  0x14   :  { %61 = vst [vmem:[#allocation2 + $0x20] sm:$0xff] %v12_v18  ;;  %v21_v24 = vld [vmem:[%s380_s0 + $0x60] sm:$0xff]  ;;  %v22_v25 = vld [vmem:[%s380_s0 + $0x68] sm:$0xff]  ;;  %v24_v26 = vld [vmem:[%s380_s0 + $0x78] sm:$0xff]  ;;  %s189_s19 = smov 512   ;;  %s190_s20 = smov 32  }
  0x15   :  { %62 = vst [vmem:[#allocation2 + $0x28] sm:$0xff] %v13_v19  ;;  %v25_v27 = vld [vmem:[%s380_s0 + $0x80] sm:$0xff]  ;;  %v27_v28 = vld [vmem:[%s380_s0 + $0x90] sm:$0xff]  ;;  %v28_v29 = vld [vmem:[%s380_s0 + $0x98] sm:$0xff] }
  0x16   :  { %64 = vst [vmem:[#allocation2 + $0x40] sm:$0xff] %v15_v20  ;;  %v30_v30 = vld [vmem:[%s380_s0 + $0xa8] sm:$0xff]  ;;  %v31_v31 = vld [vmem:[%s380_s0 + $0xb0] sm:$0xff]  ;;  %v33_v32 = vld [vmem:[%s380_s0 + $0xc0] sm:$0xff] }
  0x17   :  { %65 = vst [vmem:[#allocation2 + $0x48] sm:$0xff] %v16_v21  ;;  %v34_v33 = vld [vmem:[%s380_s0 + $0xc8] sm:$0xff]  ;;  %v36_v34 = vld [vmem:[%s380_s0 + $0xd8] sm:$0xff]  ;;  %v37_v35 = vld [vmem:[%s380_s0 + $0xe0] sm:$0xff] }
  0x18   :  { %67 = vst [vmem:[#allocation2 + $0x60] sm:$0xff] %v18_v22  ;;  %v39_v36 = vld [vmem:[%s380_s0 + $0xf0] sm:$0xff]  ;;  %v40_v37 = vld [vmem:[%s380_s0 + $0xf8] sm:$0xff]  ;;  %v42_v38 = vld [vmem:[%s380_s0 + $0x108] sm:$0xff] }
  0x19   :  { %68 = vst [vmem:[#allocation2 + $0x68] sm:$0xff] %v19_v23  ;;  %v43_v39 = vld [vmem:[%s380_s0 + $0x110] sm:$0xff]  ;;  %v45_v40 = vld [vmem:[%s380_s0 + $0x120] sm:$0xff]  ;;  %v46_v41 = vld [vmem:[%s380_s0 + $0x128] sm:$0xff] }
  0x1a   :  { %70 = vst [vmem:[#allocation2 + $0x80] sm:$0xff] %v21_v24  ;;  %v48_v42 = vld [vmem:[%s380_s0 + $0x138] sm:$0xff]  ;;  %v49_v43 = vld [vmem:[%s380_s0 + $0x140] sm:$0xff]  ;;  %v51_v44 = vld [vmem:[%s380_s0 + $0x150] sm:$0xff] }
  0x1b   :  { %71 = vst [vmem:[#allocation2 + $0x88] sm:$0xff] %v22_v25  ;;  %v52_v45 = vld [vmem:[%s380_s0 + $0x158] sm:$0xff]  ;;  %v54_v46 = vld [vmem:[%s380_s0 + $0x168] sm:$0xff]  ;;  %v55_v47 = vld [vmem:[%s380_s0 + $0x170] sm:$0xff]  ;;  %s188_s0 = smov [#allocation2]  }
  0x1c   :  { %73 = vst [vmem:[#allocation2 + $0xa0] sm:$0xff] %v24_v26  ;;  %s143_s15 = sshll.u32 %s188_s0, 4  ;;  %s144_s15 = int_to_ptr.vmem [resolvable:$true] %s143_s15 }
  0x1d   :  { %74 = vst [vmem:[#allocation2 + $0xa8] sm:$0xff] %v25_v27 }
  0x1e   :  { %76 = vst [vmem:[#allocation2 + $0xc0] sm:$0xff] %v27_v28 }
  0x1f   :  { %77 = vst [vmem:[#allocation2 + $0xc8] sm:$0xff] %v28_v29 }
  0x20   :  { %79 = vst [vmem:[#allocation2 + $0xe0] sm:$0xff] %v30_v30 }
  0x21   :  { %80 = vst [vmem:[#allocation2 + $0xe8] sm:$0xff] %v31_v31 }
  0x22   :  { %82 = vst [vmem:[#allocation2 + $0x100] sm:$0xff] %v33_v32 }
  0x23   :  { %83 = vst [vmem:[#allocation2 + $0x108] sm:$0xff] %v34_v33 }
  0x24   :  { %85 = vst [vmem:[#allocation2 + $0x120] sm:$0xff] %v36_v34 }
  0x25   :  { %86 = vst [vmem:[#allocation2 + $0x128] sm:$0xff] %v37_v35 }
  0x26   :  { %88 = vst [vmem:[#allocation2 + $0x140] sm:$0xff] %v39_v36 }
  0x27   :  { %89 = vst [vmem:[#allocation2 + $0x148] sm:$0xff] %v40_v37 }
  0x28   :  { %91 = vst [vmem:[#allocation2 + $0x160] sm:$0xff] %v42_v38 }
  0x29   :  { %92 = vst [vmem:[#allocation2 + $0x168] sm:$0xff] %v43_v39 }
  0x2a   :  { %94 = vst [vmem:[#allocation2 + $0x180] sm:$0xff] %v45_v40 }
  0x2b   :  { %95 = vst [vmem:[#allocation2 + $0x188] sm:$0xff] %v46_v41 }
  0x2c   :  { %97 = vst [vmem:[#allocation2 + $0x1a0] sm:$0xff] %v48_v42 }
  0x2d   :  { %98 = vst [vmem:[#allocation2 + $0x1a8] sm:$0xff] %v49_v43 }
  0x2e   :  { %100 = vst [vmem:[#allocation2 + $0x1c0] sm:$0xff] %v51_v44 }
  0x2f   :  { %101 = vst [vmem:[#allocation2 + $0x1c8] sm:$0xff] %v52_v45 }
  0x30   :  { %103 = vst [vmem:[#allocation2 + $0x1e0] sm:$0xff] %v54_v46 }
  0x31   :  { %104 = vst [vmem:[#allocation2 + $0x1e8] sm:$0xff] %v55_v47 }
  0x32   :  { %107 = vst.msk [vmem:[#allocation2 + $0x10] sm:$0xff] %vm106_vm1, %v187_v48 }
  0x33   :  { %108 = vst [vmem:[#allocation2 + $0x18] sm:$0xff] %v187_v48 }
  0x34   :  { %109 = vst.msk [vmem:[#allocation2 + $0x30] sm:$0xff] %vm106_vm1, %v187_v48 }
  0x35   :  { %110 = vst [vmem:[#allocation2 + $0x38] sm:$0xff] %v187_v48 }
  0x36   :  { %111 = vst.msk [vmem:[#allocation2 + $0x50] sm:$0xff] %vm106_vm1, %v187_v48 }
  0x37   :  { %112 = vst [vmem:[#allocation2 + $0x58] sm:$0xff] %v187_v48 }
  0x38   :  { %113 = vst.msk [vmem:[#allocation2 + $0x70] sm:$0xff] %vm106_vm1, %v187_v48 }
  0x39   :  { %114 = vst [vmem:[#allocation2 + $0x78] sm:$0xff] %v187_v48 }
  0x3a   :  { %115 = vst.msk [vmem:[#allocation2 + $0x90] sm:$0xff] %vm106_vm1, %v187_v48 }
  0x3b   :  { %116 = vst [vmem:[#allocation2 + $0x98] sm:$0xff] %v187_v48 }
  0x3c   :  { %117 = vst.msk [vmem:[#allocation2 + $0xb0] sm:$0xff] %vm106_vm1, %v187_v48 }
  0x3d   :  { %118 = vst [vmem:[#allocation2 + $0xb8] sm:$0xff] %v187_v48 }
  0x3e   :  { %119 = vst.msk [vmem:[#allocation2 + $0xd0] sm:$0xff] %vm106_vm1, %v187_v48 }
  0x3f   :  { %120 = vst [vmem:[#allocation2 + $0xd8] sm:$0xff] %v187_v48 }
  0x40   :  { %121 = vst.msk [vmem:[#allocation2 + $0xf0] sm:$0xff] %vm106_vm1, %v187_v48 }
  0x41   :  { %122 = vst [vmem:[#allocation2 + $0xf8] sm:$0xff] %v187_v48 }
  0x42   :  { %123 = vst.msk [vmem:[#allocation2 + $0x110] sm:$0xff] %vm106_vm1, %v187_v48 }
  0x43   :  { %124 = vst [vmem:[#allocation2 + $0x118] sm:$0xff] %v187_v48 }
  0x44   :  { %125 = vst.msk [vmem:[#allocation2 + $0x130] sm:$0xff] %vm106_vm1, %v187_v48 }
  0x45   :  { %126 = vst [vmem:[#allocation2 + $0x138] sm:$0xff] %v187_v48 }
  0x46   :  { %127 = vst.msk [vmem:[#allocation2 + $0x150] sm:$0xff] %vm106_vm1, %v187_v48 }
  0x47   :  { %128 = vst [vmem:[#allocation2 + $0x158] sm:$0xff] %v187_v48 }
  0x48   :  { %129 = vst.msk [vmem:[#allocation2 + $0x170] sm:$0xff] %vm106_vm1, %v187_v48 }
  0x49   :  { %130 = vst [vmem:[#allocation2 + $0x178] sm:$0xff] %v187_v48 }
  0x4a   :  { %131 = vst.msk [vmem:[#allocation2 + $0x190] sm:$0xff] %vm106_vm1, %v187_v48 }
  0x4b   :  { %132 = vst [vmem:[#allocation2 + $0x198] sm:$0xff] %v187_v48 }
  0x4c   :  { %133 = vst.msk [vmem:[#allocation2 + $0x1b0] sm:$0xff] %vm106_vm1, %v187_v48 }
  0x4d   :  { %134 = vst [vmem:[#allocation2 + $0x1b8] sm:$0xff] %v187_v48 }
  0x4e   :  { %135 = vst.msk [vmem:[#allocation2 + $0x1d0] sm:$0xff] %vm106_vm1, %v187_v48 }
  0x4f   :  { %136 = vst [vmem:[#allocation2 + $0x1d8] sm:$0xff] %v187_v48 }
  0x50   :  { %137 = vst.msk [vmem:[#allocation2 + $0x1f0] sm:$0xff] %vm106_vm1, %v187_v48 }
  0x51   :  { %138 = vst [vmem:[#allocation2 + $0x1f8] sm:$0xff] %v187_v48 }
  0x52   :  { %151 = dma.vmem_to_hbm [thread:$0]  %s144_s15, 8192, %s146_s18, [#allocation3], %s189_s19, %s189_s19, %s190_s20  }
  0x53   :  { %185 = dma.done.wait [#allocation3], 8192  }
  0x54   :  { %186 = vsyncadd [#allocation3], 4294959104 }
  0x55   :  { %156 = vsyncpa [#allocation3], 1 }

</bundles_post_ra>
